<compile_context>
chip_gen: v5e
topology: v5e:2x2
jax: 0.10.0
libtpu: 0.0.40
codegen_flags: <defaults>
</compile_context>

<pallas_src>
import jax
import jax.numpy as jnp
from jax.experimental import pallas as pl
from jax.experimental.pallas import tpu as pltpu

LANES = 128
_TARGET_BLOCK_BYTES = 2 * 1024 * 1024  # ~2 MiB per block


def _hsigmoid_kernel(x_ref, o_ref):
    x = x_ref[...]
    # relu6(x + 3) / 6  ==  clamp(x + 3, 0, 6) * (1/6)
    y = jnp.clip(x + 3.0, 0.0, 6.0) * (1.0 / 6.0)
    o_ref[...] = y.astype(o_ref.dtype)


def _hsigmoid_jnp(x):
    return (jnp.clip(x + 3.0, 0.0, 6.0) / 6.0).astype(x.dtype)


def _sublane_granule(dtype) -> int:
    # Sub-32-bit dtypes pack along sublanes: min row tile is 8 * (4 / itemsize).
    itemsize = jnp.dtype(dtype).itemsize
    return max(8, (4 // max(itemsize, 1)) * 8)


def _hsigmoid_2d(x2d: jax.Array) -> jax.Array:
    rows, cols = x2d.shape
    dtype = x2d.dtype
    itemsize = jnp.dtype(dtype).itemsize
    granule = _sublane_granule(dtype)

    # Row tile sized for ~2 MiB blocks, rounded to the packed sublane granule,
    # and clamped so tiny inputs don't allocate an oversized VMEM block.
    tr = _TARGET_BLOCK_BYTES // (cols * itemsize)
    tr = max(granule, (tr // granule) * granule)
    tr = min(tr, pl.cdiv(rows, granule) * granule)

    grid = (pl.cdiv(rows, tr),)  # partial last block is masked by Pallas

    return pl.pallas_call(
        _hsigmoid_kernel,
        out_shape=jax.ShapeDtypeStruct((rows, cols), dtype),
        grid=grid,
        in_specs=[pl.BlockSpec((tr, cols), lambda i: (i, 0))],
        out_specs=pl.BlockSpec((tr, cols), lambda i: (i, 0)),
        compiler_params=pltpu.CompilerParams(
            dimension_semantics=("parallel",)
        ),
    )(x2d)


def hsigmoid(x: jax.Array) -> jax.Array:
    """Hard sigmoid, elementwise, any shape / float dtype. Matches F.relu6(x+3)/6."""
    orig_shape = x.shape
    n = x.size
    if n == 0:
        return x

    x_flat = jnp.ravel(x)
    bulk = (n // LANES) * LANES

    if bulk == n:
        # Common path: pure metadata reshape, no padding/copies.
        out2d = _hsigmoid_2d(x_flat.reshape(n // LANES, LANES))
        return out2d.reshape(orig_shape)

    if bulk == 0:
        # Tiny input (< 128 elements): not worth a kernel launch.
        return _hsigmoid_jnp(x)

    # Rare lane-misaligned path: kernel over the aligned bulk, plain jnp over the
    # small (<128 element) tail. Avoids materializing a full padded copy of x.
    out_bulk = _hsigmoid_2d(x_flat[:bulk].reshape(bulk // LANES, LANES)).reshape(-1)
    out_tail = _hsigmoid_jnp(x_flat[bulk:])
    return jnp.concatenate([out_bulk, out_tail]).reshape(orig_shape)


def hsigmoid_ref(x):
    return (jnp.clip(x.astype(jnp.float32) + 3.0, 0.0, 6.0) / 6.0).astype(x.dtype)


if __name__ == "__main__":
    key = jax.random.PRNGKey(0)

    # NCHW input, as the PyTorch module would see it.
    x = jax.random.normal(key, (2, 4, 16, 16), dtype=jnp.float32) * 4.0
    y = jax.block_until_ready(hsigmoid(x))
    y_ref = hsigmoid_ref(x)
    assert y.shape == x.shape and y.dtype == x.dtype
    assert jnp.allclose(y, y_ref, atol=1e-6, rtol=1e-6)

    # bf16 path (dtype-aware sublane granule).
    xb = (jax.random.normal(key, (2, 4, 16, 16), dtype=jnp.float32) * 4.0).astype(jnp.bfloat16)
    yb = jax.block_until_ready(hsigmoid(xb))
    assert yb.shape == xb.shape and yb.dtype == xb.dtype
    assert jnp.allclose(yb.astype(jnp.float32), hsigmoid_ref(xb).astype(jnp.float32),
                        atol=1e-2, rtol=1e-2)

    # Lane-misaligned shape (bulk kernel + small jnp tail).
    xm = jax.random.normal(key, (1, 3, 10, 13), dtype=jnp.float32) * 4.0
    ym = jax.block_until_ready(hsigmoid(xm))
    assert ym.shape == xm.shape and ym.dtype == xm.dtype
    assert jnp.allclose(ym, hsigmoid_ref(xm), atol=1e-6, rtol=1e-6)

    print("KERNEL_OK")
</pallas_src>

<mosaic_0001>
module attributes {stable_mosaic.version = 11 : i64} {
  func.func @_hsigmoid_kernel(%arg0: i32, %arg1: memref<16x128xf32, #tpu.memory_space<vmem>>, %arg2: memref<16x128xf32, #tpu.memory_space<vmem>>) attributes {dimension_semantics = [#tpu.dimension_semantics<parallel>], iteration_bounds = array<i64: 1>, scalar_prefetch = 0 : i64, scratch_operands = 0 : i64, tpu.core_type = #tpu.core_type<tc>, window_params = [{transform_indices = @transform_0, window_bounds = array<i64: 16, 128>}, {transform_indices = @transform_1, window_bounds = array<i64: 16, 128>}]} {
    %c0 = arith.constant 0 : index
    %c0_0 = arith.constant 0 : index
    %0 = vector.load %arg1[%c0, %c0_0] : memref<16x128xf32, #tpu.memory_space<vmem>>, vector<16x128xf32>
    %cst = arith.constant 3.000000e+00 : f32
    %1 = vector.broadcast %cst : f32 to vector<16x128xf32>
    %2 = arith.addf %0, %1 : vector<16x128xf32>
    %cst_1 = arith.constant 0.000000e+00 : f32
    %cst_2 = arith.constant 6.000000e+00 : f32
    %3 = vector.broadcast %cst_1 : f32 to vector<16x128xf32>
    %4 = arith.maximumf %3, %2 : vector<16x128xf32>
    %5 = vector.broadcast %cst_2 : f32 to vector<16x128xf32>
    %6 = arith.minimumf %5, %4 : vector<16x128xf32>
    %cst_3 = arith.constant 0.166666672 : f32
    %7 = vector.broadcast %cst_3 : f32 to vector<16x128xf32>
    %8 = arith.mulf %6, %7 : vector<16x128xf32>
    %c0_4 = arith.constant 0 : index
    %c0_5 = arith.constant 0 : index
    %9 = vector.load %arg2[%c0_4, %c0_5] : memref<16x128xf32, #tpu.memory_space<vmem>>, vector<16x128xf32>
    tpu.vector_store %arg2[%c0_4, %c0_5], %8 {strides = array<i32>} : memref<16x128xf32, #tpu.memory_space<vmem>>, vector<16x128xf32>,
    return
  }
  func.func @transform_0(%arg0: i32) -> (i32, i32) {
    %c0_i32 = arith.constant 0 : i32
    %c0_i32_0 = arith.constant 0 : i32
    return %arg0, %c0_i32 : i32, i32
  }
  func.func @transform_1(%arg0: i32) -> (i32, i32) {
    %c0_i32 = arith.constant 0 : i32
    %c0_i32_0 = arith.constant 0 : i32
    return %arg0, %c0_i32 : i32, i32
  }
}

</mosaic_0001>

<bundles_post_ra>
// kernel: tpu_custom_call.1
= control target key start
LH: loop header
LB: loop body
LE: loop exit
PB: predicated region body
PF: predicated region fallthrough
CT: control target
= control target key end

     0   :  { %6 = vsyncpa [#allocation3], 0  ;;  %s132_s0 = inlined_call_operand.hbm [shape: f32[16,128], index: 0, kind: input, shape index: {}]   ;;  %s133_s1 = inlined_call_operand.hbm [shape: f32[16,128], index: 1, kind: output, shape index: {}]  }
   0x1   :  { %7 = vsyncpa [#allocation4], 0  ;;  %s12_s8 = sshll.u32 %s132_s0, 4  ;;  %s112_s9 = smov [#allocation2]   ;;  %s13_s8 = int_to_ptr.hbm [resolvable:$true] %s12_s8 }
   0x2   :  { %s14_s10 = sshll.u32 %s112_s9, 4  ;;  %s113_s11 = smov 128   ;;  %s15_s10 = int_to_ptr.vmem [resolvable:$true] %s14_s10 }
   0x3   :  { %s114_s12 = smov 8  }
   0x4   :  { %20 = dma.hbm_to_vmem [thread:$0]  %s13_s8, 256, %s15_s10, [#allocation3], %s113_s11, %s113_s11, %s114_s12  }
   0x5   :  { %108 = dma.done.wait [#allocation3], 256  }
   0x6   :  { %109 = vsyncadd [#allocation3], 4294967040  ;;  %v25_v0 = vld [vmem:[#allocation2] sm:$0xff]  ;;  %v26_v1 = vld [vmem:[#allocation2 + $0x8] sm:$0xff]  ;;  %s115_s13 = smov [#allocation5]   ;;  %s43_s16 = sshll.u32 %s133_s1, 4  ;;  %s44_s16 = int_to_ptr.hbm [resolvable:$true] %s43_s16 }
   0x7   :  { %v27_v2 = vadd.f32 3.0, %v25_v0  ;;  %v28_v3 = vadd.f32 3.0, %v26_v1  ;;  %s41_s14 = sshll.u32 %s115_s13, 4  ;;  %s42_s14 = int_to_ptr.vmem [resolvable:$true] %s41_s14 }
   0x9   :  { %v29_v4 = vmax.f32 %v27_v2, 0.0  ;;  %v30_v5 = vmax.f32 %v28_v3, 0.0 }
   0xb   :  { %v31_v6 = vmin.f32 %v29_v4, 6.0  ;;  %v32_v7 = vmin.f32 %v30_v5, 6.0 }
   0xd   :  { %v33_v8 = vmul.f32 0.16666667, %v31_v6  ;;  %v34_v9 = vmul.f32 0.16666667, %v32_v7 }
   0xf   :  { %35 = vst [vmem:[#allocation5] sm:$0xff] %v33_v8 }
  0x10   :  { %36 = vst [vmem:[#allocation5 + $0x8] sm:$0xff] %v34_v9 }
  0x11   :  { %49 = dma.vmem_to_hbm [thread:$0]  %s42_s14, 256, %s44_s16, [#allocation4], %s113_s11, %s113_s11, %s114_s12  }
  0x12   :  { %110 = dma.done.wait [#allocation4], 256  }
  0x13   :  { %111 = vsyncadd [#allocation4], 4294967040 }
  0x14   :  { %54 = vsyncpa [#allocation3], 1 }
  0x15   :  { %55 = vsyncpa [#allocation4], 1 }

</bundles_post_ra>
